<compile_context>
chip_gen: v7x
topology: tpu7x:2x2x1
jax: 0.10.0
libtpu: 0.0.40
codegen_flags: <defaults>
</compile_context>

<pallas_src>
import functools

import jax
import jax.numpy as jnp
from jax import lax
from jax.experimental import pallas as pl
from jax.experimental.pallas import tpu as pltpu


def make_gat2_kernel(heads, c1):
    """Fused 2-layer GAT forward. `heads` / `c1` are static layer-1 shapes."""

    def attention(alpha_dst, alpha_src, h_bf, adj_bias):
        # alpha_dst: [N,1] f32, alpha_src: [1,N] f32, h_bf: [N,C] bf16,
        # adj_bias: [N,N] bf16 additive mask (0 on edges/self-loops, -1e30 else).
        raw = alpha_dst + alpha_src                                   # [N, N] f32
        act = jnp.where(raw >= 0, raw, 0.2 * raw)                     # LeakyReLU(0.2)
        logits = act + adj_bias            # bf16 promoted per-tile in vregs (matches PyG: mask after act)
        m = jnp.max(logits, axis=-1, keepdims=True)                   # self-loop => finite
        p = jnp.exp(logits - m)
        s = jnp.sum(p, axis=-1, keepdims=True)
        agg = jnp.dot(p.astype(jnp.bfloat16), h_bf,
                      preferred_element_type=jnp.float32)             # [N, C]
        # Softmax divide hoisted out of the [N,N] tile; EUP reciprocal (~free slot).
        # NOTE: approx=True has ~1e-3 rel err -- use approx=False for strict parity tests.
        return agg * pl.reciprocal(s, approx=True)

    def kernel(x_ref, w1_ref, sdst1_ref, ssrc1t_ref, b1_ref,
               w2_ref, as2_ref, ad2_ref, b2_ref, adj_ref, out_ref, x1_scr):
        adj_bias = adj_ref[...]                      # stays bf16; no up-front f32 copy

        # ---- layer 1: one lane-dense bf16 matmul for all heads ----
        h1 = jnp.dot(x_ref[...], w1_ref[...],
                     preferred_element_type=jnp.float32)              # [N, H*C1] f32
        # Batched alphas: two small MXU matmuls against block-structured
        # projection matrices instead of 2*H eight-lane reductions.
        alpha_dst = jnp.dot(h1, sdst1_ref[...],
                            preferred_element_type=jnp.float32)       # [N, H]
        alpha_src = lax.dot_general(ssrc1t_ref[...], h1,
                                    (((1,), (1,)), ((), ())),
                                    preferred_element_type=jnp.float32)  # [H, N]
        h1_bf = h1.astype(jnp.bfloat16)
        for hd in range(heads):          # static unroll; each head's [N,N] tiles are
            lo = hd * c1                 # consumed before the next head starts
            agg = attention(alpha_dst[:, hd:hd + 1], alpha_src[hd:hd + 1, :],
                            h1_bf[:, lo:lo + c1], adj_bias)
            x1_scr[:, lo:lo + c1] = agg                  # lane-offset store, no concat
        x1 = jnp.maximum(x1_scr[...] + b1_ref[...], 0.0)              # bias + fused ReLU

        # ---- layer 2: single head, concat=False (mean over 1 head = identity);
        #      output channels zero-padded to 128 lanes in the wrapper ----
        h2 = jnp.dot(x1.astype(jnp.bfloat16), w2_ref[...],
                     preferred_element_type=jnp.float32)              # [N, 128]
        a_dst2 = jnp.sum(h2 * ad2_ref[...], axis=-1, keepdims=True)   # [N, 1]
        a_src2 = lax.dot_general(as2_ref[...], h2, (((1,), (1,)), ((), ())),
                                 preferred_element_type=jnp.float32)  # [1, N]
        o2 = attention(a_dst2, a_src2, h2.astype(jnp.bfloat16), adj_bias)
        out_ref[...] = o2 + b2_ref[...]                  # lane-dense [N,128] store

    return kernel


@functools.partial(jax.jit, static_argnames=("heads", "c1", "c2", "out_pad"))
def gat_forward(x, adj_bias, w1, sdst1, ssrc1_t, b1, w2p, as2p, ad2p, b2p,
                *, heads, c1, c2, out_pad):
    n = x.shape[0]
    hc1 = heads * c1
    vmem = pl.BlockSpec(memory_space=pltpu.MemorySpace.VMEM)
    out_padded = pl.pallas_call(
        make_gat2_kernel(heads, c1),
        out_shape=jax.ShapeDtypeStruct((n, out_pad), jnp.float32),
        in_specs=[vmem] * 10,
        out_specs=vmem,
        scratch_shapes=[pltpu.VMEM((n, hc1), jnp.float32)],
    )(x.astype(jnp.bfloat16), w1, sdst1, ssrc1_t, b1, w2p, as2p, ad2p, b2p, adj_bias)
    return out_padded[:, :c2]


def prepare_gat_inputs(params, edge_index, num_nodes, out_pad=128):
    """One-time preprocessing hoisted out of the hot path (per review):
    adjacency-bias scatter, head fusion / padding of weight layouts."""
    heads, fin, c1 = params["w1"].shape
    hc1 = heads * c1
    c2 = params["w2"].shape[2]

    # Additive attention bias: 0 where adj[dst, src]=1 (incl. forced self-loops),
    # -1e30 otherwise; bf16 halves DMA/VMEM bytes of the dominant [N,N] payload.
    src, dst = edge_index[0], edge_index[1]
    adj = jnp.zeros((num_nodes, num_nodes), jnp.float32).at[dst, src].set(1.0)
    adj = jnp.maximum(adj, jnp.eye(num_nodes, dtype=jnp.float32))
    adj_bias = jnp.where(adj > 0, 0.0, -1e30).astype(jnp.bfloat16)

    # Layer-1 weights: heads fused on the lane axis; bf16 MXU operand.
    w1 = jnp.transpose(params["w1"], (1, 0, 2)).reshape(fin, hc1).astype(jnp.bfloat16)
    b1 = params["b1"].reshape(1, hc1)

    # Attention vectors folded into block-structured projection matrices:
    #   alpha_dst[:, h] = <h1_head_h, ad1_h>  via  h1 @ sdst1        -> [N, H]
    #   alpha_src[h, :] = <h1_head_h, as1_h>  via  ssrc1_t . h1^T    -> [H, N]
    blk = jnp.repeat(jnp.eye(heads, dtype=jnp.float32), c1, axis=0)   # [H*C1, H]
    sdst1 = blk * params["ad1"].reshape(hc1, 1)                       # [H*C1, H]
    ssrc1_t = (blk * params["as1"].reshape(hc1, 1)).T                 # [H, H*C1]

    # Layer-2 weights zero-padded to a lane-dense (out_pad-wide) output.
    pad = out_pad - c2
    w2p = jnp.pad(params["w2"][0], ((0, 0), (0, pad))).astype(jnp.bfloat16)
    as2p = jnp.pad(params["as2"][0], ((0, 0), (0, pad)))
    ad2p = jnp.pad(params["ad2"][0], ((0, 0), (0, pad)))
    b2p = jnp.pad(params["b2"][0], ((0, 0), (0, pad)))

    arrays = dict(adj_bias=adj_bias, w1=w1, sdst1=sdst1, ssrc1_t=ssrc1_t, b1=b1,
                  w2p=w2p, as2p=as2p, ad2p=ad2p, b2p=b2p)
    static = dict(heads=int(heads), c1=int(c1), c2=int(c2), out_pad=int(out_pad))
    return arrays, static


def init_params(key, in_channels, hidden_channels, out_channels, heads):
    ks = jax.random.split(key, 8)

    def glorot(k, shape, fan_in, fan_out):
        lim = (6.0 / (fan_in + fan_out)) ** 0.5
        return jax.random.uniform(k, shape, jnp.float32, -lim, lim)

    return {
        "w1": glorot(ks[0], (heads, in_channels, hidden_channels),
                     in_channels, heads * hidden_channels),
        "as1": glorot(ks[1], (heads, 1, hidden_channels), hidden_channels, 1),
        "ad1": glorot(ks[2], (heads, 1, hidden_channels), hidden_channels, 1),
        "b1": jnp.zeros((heads, 1, hidden_channels), jnp.float32),
        "w2": glorot(ks[3], (1, heads * hidden_channels, out_channels),
                     heads * hidden_channels, out_channels),
        "as2": glorot(ks[4], (1, 1, out_channels), out_channels, 1),
        "ad2": glorot(ks[5], (1, 1, out_channels), out_channels, 1),
        "b2": jnp.zeros((1, 1, out_channels), jnp.float32),
    }


if __name__ == "__main__":
    in_channels, hidden_channels, out_channels, heads = 32, 8, 2, 4
    num_nodes, num_edges = 16, 40

    key = jax.random.PRNGKey(0)
    k_x, k_e, k_p = jax.random.split(key, 3)

    x = jax.random.normal(k_x, (num_nodes, in_channels), jnp.float32)
    edge_index = jax.random.randint(k_e, (2, num_edges), 0, num_nodes, jnp.int32)
    params = init_params(k_p, in_channels, hidden_channels, out_channels, heads)

    # One-time preprocessing (adjacency bias + fused/padded weight layouts),
    # kept outside the jitted per-step forward.
    arrays, static = prepare_gat_inputs(params, edge_index, num_nodes)

    out = gat_forward(x, **arrays, **static)
    jax.block_until_ready(out)
    assert out.shape == (num_nodes, out_channels)
    print("KERNEL_OK")
</pallas_src>

<mosaic_0001>
module attributes {stable_mosaic.version = 11 : i64} {
  func.func @kernel(%arg0: memref<16x32xbf16, #tpu.memory_space<vmem>>, %arg1: memref<32x32xbf16, #tpu.memory_space<vmem>>, %arg2: memref<32x4xf32, #tpu.memory_space<vmem>>, %arg3: memref<4x32xf32, #tpu.memory_space<vmem>>, %arg4: memref<1x32xf32, #tpu.memory_space<vmem>>, %arg5: memref<32x128xbf16, #tpu.memory_space<vmem>>, %arg6: memref<1x128xf32, #tpu.memory_space<vmem>>, %arg7: memref<1x128xf32, #tpu.memory_space<vmem>>, %arg8: memref<1x128xf32, #tpu.memory_space<vmem>>, %arg9: memref<16x16xbf16, #tpu.memory_space<vmem>>, %arg10: memref<16x128xf32, #tpu.memory_space<vmem>>, %arg11: memref<16x32xf32, #tpu.memory_space<vmem>>) attributes {dimension_semantics = [], scalar_prefetch = 0 : i64, scratch_operands = 1 : i64, tpu.core_type = #tpu.core_type<tc>} {
    %c0 = arith.constant 0 : index
    %c0_0 = arith.constant 0 : index
    %0 = vector.load %arg9[%c0, %c0_0] : memref<16x16xbf16, #tpu.memory_space<vmem>>, vector<16x16xbf16>
    %c0_1 = arith.constant 0 : index
    %c0_2 = arith.constant 0 : index
    %1 = vector.load %arg0[%c0_1, %c0_2] : memref<16x32xbf16, #tpu.memory_space<vmem>>, vector<16x32xbf16>
    %c0_3 = arith.constant 0 : index
    %c0_4 = arith.constant 0 : index
    %2 = vector.load %arg1[%c0_3, %c0_4] : memref<32x32xbf16, #tpu.memory_space<vmem>>, vector<32x32xbf16>
    %cst = arith.constant dense<0.000000e+00> : vector<16x32xf32>
    %3 = tpu.matmul %1, %2, %cst {dimension_numbers = #tpu.dot_dimension_numbers<[1], [0], [0], [1], [0, 0, 1, 1], [], []>} : vector<16x32xbf16>, vector<32x32xbf16>, vector<16x32xf32> -> vector<16x32xf32>
    %c0_5 = arith.constant 0 : index
    %c0_6 = arith.constant 0 : index
    %4 = vector.load %arg2[%c0_5, %c0_6] : memref<32x4xf32, #tpu.memory_space<vmem>>, vector<32x4xf32>
    %cst_7 = arith.constant dense<0.000000e+00> : vector<16x4xf32>
    %5 = tpu.matmul %3, %4, %cst_7 {dimension_numbers = #tpu.dot_dimension_numbers<[1], [0], [0], [1], [0, 0, 1, 1], [], []>} : vector<16x32xf32>, vector<32x4xf32>, vector<16x4xf32> -> vector<16x4xf32>
    %c0_8 = arith.constant 0 : index
    %c0_9 = arith.constant 0 : index
    %6 = vector.load %arg3[%c0_8, %c0_9] : memref<4x32xf32, #tpu.memory_space<vmem>>, vector<4x32xf32>
    %cst_10 = arith.constant dense<0.000000e+00> : vector<4x16xf32>
    %7 = tpu.matmul %6, %3, %cst_10 {dimension_numbers = #tpu.dot_dimension_numbers<[1], [1], [0], [0], [0, 0, 1, 0], [], []>} : vector<4x32xf32>, vector<16x32xf32>, vector<4x16xf32> -> vector<4x16xf32>
    %8 = arith.truncf %3 : vector<16x32xf32> to vector<16x32xbf16>
    %9 = vector.extract_strided_slice %5 {offsets = [0, 0], sizes = [16, 1], strides = [1, 1]} : vector<16x4xf32> to vector<16x1xf32>
    %10 = vector.extract_strided_slice %7 {offsets = [0, 0], sizes = [1, 16], strides = [1, 1]} : vector<4x16xf32> to vector<1x16xf32>
    %11 = vector.extract_strided_slice %8 {offsets = [0, 0], sizes = [16, 8], strides = [1, 1]} : vector<16x32xbf16> to vector<16x8xbf16>
    %12 = vector.broadcast %9 : vector<16x1xf32> to vector<16x16xf32>
    %13 = vector.broadcast %10 : vector<1x16xf32> to vector<16x16xf32>
    %14 = arith.addf %12, %13 : vector<16x16xf32>
    %cst_11 = arith.constant 0.000000e+00 : f32
    %15 = vector.broadcast %cst_11 : f32 to vector<16x16xf32>
    %16 = arith.cmpf oge, %14, %15 : vector<16x16xf32>
    %cst_12 = arith.constant 2.000000e-01 : f32
    %17 = vector.broadcast %cst_12 : f32 to vector<16x16xf32>
    %18 = arith.mulf %17, %14 : vector<16x16xf32>
    %19 = arith.select %16, %14, %18 : vector<16x16xi1>, vector<16x16xf32>
    %20 = arith.extf %0 : vector<16x16xbf16> to vector<16x16xf32>
    %21 = arith.addf %19, %20 : vector<16x16xf32>
    %cst_13 = arith.constant dense<0xFF800000> : vector<16xf32>
    %22 = vector.multi_reduction <maximumf>, %21, %cst_13 [1] : vector<16x16xf32> to vector<16xf32>
    %23 = vector.shape_cast %22 : vector<16xf32> to vector<16x1xf32>
    %24 = vector.broadcast %23 : vector<16x1xf32> to vector<16x16xf32>
    %25 = arith.subf %21, %24 : vector<16x16xf32>
    %26 = math.exp %25 : vector<16x16xf32>
    %cst_14 = arith.constant dense<0.000000e+00> : vector<16xf32>
    %27 = vector.multi_reduction <add>, %26, %cst_14 [1] : vector<16x16xf32> to vector<16xf32>
    %28 = vector.shape_cast %27 : vector<16xf32> to vector<16x1xf32>
    %29 = arith.truncf %26 : vector<16x16xf32> to vector<16x16xbf16>
    %cst_15 = arith.constant dense<0.000000e+00> : vector<16x8xf32>
    %30 = tpu.matmul %29, %11, %cst_15 {dimension_numbers = #tpu.dot_dimension_numbers<[1], [0], [0], [1], [0, 0, 1, 1], [], []>} : vector<16x16xbf16>, vector<16x8xbf16>, vector<16x8xf32> -> vector<16x8xf32>
    %31 = tpu.reciprocal %28 {approx = true} : vector<16x1xf32> -> vector<16x1xf32>
    %32 = vector.broadcast %31 : vector<16x1xf32> to vector<16x8xf32>
    %33 = arith.mulf %30, %32 : vector<16x8xf32>
    %c0_16 = arith.constant 0 : index
    %c0_17 = arith.constant 0 : index
    %34 = vector.load %arg11[%c0_16, %c0_17] : memref<16x32xf32, #tpu.memory_space<vmem>>, vector<16x8xf32>
    tpu.vector_store %arg11[%c0_16, %c0_17], %33 {strides = array<i32>} : memref<16x32xf32, #tpu.memory_space<vmem>>, vector<16x8xf32>,
    %35 = vector.extract_strided_slice %5 {offsets = [0, 1], sizes = [16, 1], strides = [1, 1]} : vector<16x4xf32> to vector<16x1xf32>
    %36 = vector.extract_strided_slice %7 {offsets = [1, 0], sizes = [1, 16], strides = [1, 1]} : vector<4x16xf32> to vector<1x16xf32>
    %37 = vector.extract_strided_slice %8 {offsets = [0, 8], sizes = [16, 8], strides = [1, 1]} : vector<16x32xbf16> to vector<16x8xbf16>
    %38 = vector.broadcast %35 : vector<16x1xf32> to vector<16x16xf32>
    %39 = vector.broadcast %36 : vector<1x16xf32> to vector<16x16xf32>
    %40 = arith.addf %38, %39 : vector<16x16xf32>
    %cst_18 = arith.constant 0.000000e+00 : f32
    %41 = vector.broadcast %cst_18 : f32 to vector<16x16xf32>
    %42 = arith.cmpf oge, %40, %41 : vector<16x16xf32>
    %cst_19 = arith.constant 2.000000e-01 : f32
    %43 = vector.broadcast %cst_19 : f32 to vector<16x16xf32>
    %44 = arith.mulf %43, %40 : vector<16x16xf32>
    %45 = arith.select %42, %40, %44 : vector<16x16xi1>, vector<16x16xf32>
    %46 = arith.extf %0 : vector<16x16xbf16> to vector<16x16xf32>
    %47 = arith.addf %45, %46 : vector<16x16xf32>
    %cst_20 = arith.constant dense<0xFF800000> : vector<16xf32>
    %48 = vector.multi_reduction <maximumf>, %47, %cst_20 [1] : vector<16x16xf32> to vector<16xf32>
    %49 = vector.shape_cast %48 : vector<16xf32> to vector<16x1xf32>
    %50 = vector.broadcast %49 : vector<16x1xf32> to vector<16x16xf32>
    %51 = arith.subf %47, %50 : vector<16x16xf32>
    %52 = math.exp %51 : vector<16x16xf32>
    %cst_21 = arith.constant dense<0.000000e+00> : vector<16xf32>
    %53 = vector.multi_reduction <add>, %52, %cst_21 [1] : vector<16x16xf32> to vector<16xf32>
    %54 = vector.shape_cast %53 : vector<16xf32> to vector<16x1xf32>
    %55 = arith.truncf %52 : vector<16x16xf32> to vector<16x16xbf16>
    %cst_22 = arith.constant dense<0.000000e+00> : vector<16x8xf32>
    %56 = tpu.matmul %55, %37, %cst_22 {dimension_numbers = #tpu.dot_dimension_numbers<[1], [0], [0], [1], [0, 0, 1, 1], [], []>} : vector<16x16xbf16>, vector<16x8xbf16>, vector<16x8xf32> -> vector<16x8xf32>
    %57 = tpu.reciprocal %54 {approx = true} : vector<16x1xf32> -> vector<16x1xf32>
    %58 = vector.broadcast %57 : vector<16x1xf32> to vector<16x8xf32>
    %59 = arith.mulf %56, %58 : vector<16x8xf32>
    %c0_23 = arith.constant 0 : index
    %c8 = arith.constant 8 : index
    %60 = vector.load %arg11[%c0_23, %c8] : memref<16x32xf32, #tpu.memory_space<vmem>>, vector<16x8xf32>
    tpu.vector_store %arg11[%c0_23, %c8], %59 {strides = array<i32>} : memref<16x32xf32, #tpu.memory_space<vmem>>, vector<16x8xf32>,
    %61 = vector.extract_strided_slice %5 {offsets = [0, 2], sizes = [16, 1], strides = [1, 1]} : vector<16x4xf32> to vector<16x1xf32>
    %62 = vector.extract_strided_slice %7 {offsets = [2, 0], sizes = [1, 16], strides = [1, 1]} : vector<4x16xf32> to vector<1x16xf32>
    %63 = vector.extract_strided_slice %8 {offsets = [0, 16], sizes = [16, 8], strides = [1, 1]} : vector<16x32xbf16> to vector<16x8xbf16>
    %64 = vector.broadcast %61 : vector<16x1xf32> to vector<16x16xf32>
    %65 = vector.broadcast %62 : vector<1x16xf32> to vector<16x16xf32>
    %66 = arith.addf %64, %65 : vector<16x16xf32>
    %cst_24 = arith.constant 0.000000e+00 : f32
    %67 = vector.broadcast %cst_24 : f32 to vector<16x16xf32>
    %68 = arith.cmpf oge, %66, %67 : vector<16x16xf32>
    %cst_25 = arith.constant 2.000000e-01 : f32
    %69 = vector.broadcast %cst_25 : f32 to vector<16x16xf32>
    %70 = arith.mulf %69, %66 : vector<16x16xf32>
    %71 = arith.select %68, %66, %70 : vector<16x16xi1>, vector<16x16xf32>
    %72 = arith.extf %0 : vector<16x16xbf16> to vector<16x16xf32>
    %73 = arith.addf %71, %72 : vector<16x16xf32>
    %cst_26 = arith.constant dense<0xFF800000> : vector<16xf32>
    %74 = vector.multi_reduction <maximumf>, %73, %cst_26 [1] : vector<16x16xf32> to vector<16xf32>
    %75 = vector.shape_cast %74 : vector<16xf32> to vector<16x1xf32>
    %76 = vector.broadcast %75 : vector<16x1xf32> to vector<16x16xf32>
    %77 = arith.subf %73, %76 : vector<16x16xf32>
    %78 = math.exp %77 : vector<16x16xf32>
    %cst_27 = arith.constant dense<0.000000e+00> : vector<16xf32>
    %79 = vector.multi_reduction <add>, %78, %cst_27 [1] : vector<16x16xf32> to vector<16xf32>
    %80 = vector.shape_cast %79 : vector<16xf32> to vector<16x1xf32>
    %81 = arith.truncf %78 : vector<16x16xf32> to vector<16x16xbf16>
    %cst_28 = arith.constant dense<0.000000e+00> : vector<16x8xf32>
    %82 = tpu.matmul %81, %63, %cst_28 {dimension_numbers = #tpu.dot_dimension_numbers<[1], [0], [0], [1], [0, 0, 1, 1], [], []>} : vector<16x16xbf16>, vector<16x8xbf16>, vector<16x8xf32> -> vector<16x8xf32>
    %83 = tpu.reciprocal %80 {approx = true} : vector<16x1xf32> -> vector<16x1xf32>
    %84 = vector.broadcast %83 : vector<16x1xf32> to vector<16x8xf32>
    %85 = arith.mulf %82, %84 : vector<16x8xf32>
    %c0_29 = arith.constant 0 : index
    %c16 = arith.constant 16 : index
    %86 = vector.load %arg11[%c0_29, %c16] : memref<16x32xf32, #tpu.memory_space<vmem>>, vector<16x8xf32>
    tpu.vector_store %arg11[%c0_29, %c16], %85 {strides = array<i32>} : memref<16x32xf32, #tpu.memory_space<vmem>>, vector<16x8xf32>,
    %87 = vector.extract_strided_slice %5 {offsets = [0, 3], sizes = [16, 1], strides = [1, 1]} : vector<16x4xf32> to vector<16x1xf32>
    %88 = vector.extract_strided_slice %7 {offsets = [3, 0], sizes = [1, 16], strides = [1, 1]} : vector<4x16xf32> to vector<1x16xf32>
    %89 = vector.extract_strided_slice %8 {offsets = [0, 24], sizes = [16, 8], strides = [1, 1]} : vector<16x32xbf16> to vector<16x8xbf16>
    %90 = vector.broadcast %87 : vector<16x1xf32> to vector<16x16xf32>
    %91 = vector.broadcast %88 : vector<1x16xf32> to vector<16x16xf32>
    %92 = arith.addf %90, %91 : vector<16x16xf32>
    %cst_30 = arith.constant 0.000000e+00 : f32
    %93 = vector.broadcast %cst_30 : f32 to vector<16x16xf32>
    %94 = arith.cmpf oge, %92, %93 : vector<16x16xf32>
    %cst_31 = arith.constant 2.000000e-01 : f32
    %95 = vector.broadcast %cst_31 : f32 to vector<16x16xf32>
    %96 = arith.mulf %95, %92 : vector<16x16xf32>
    %97 = arith.select %94, %92, %96 : vector<16x16xi1>, vector<16x16xf32>
    %98 = arith.extf %0 : vector<16x16xbf16> to vector<16x16xf32>
    %99 = arith.addf %97, %98 : vector<16x16xf32>
    %cst_32 = arith.constant dense<0xFF800000> : vector<16xf32>
    %100 = vector.multi_reduction <maximumf>, %99, %cst_32 [1] : vector<16x16xf32> to vector<16xf32>
    %101 = vector.shape_cast %100 : vector<16xf32> to vector<16x1xf32>
    %102 = vector.broadcast %101 : vector<16x1xf32> to vector<16x16xf32>
    %103 = arith.subf %99, %102 : vector<16x16xf32>
    %104 = math.exp %103 : vector<16x16xf32>
    %cst_33 = arith.constant dense<0.000000e+00> : vector<16xf32>
    %105 = vector.multi_reduction <add>, %104, %cst_33 [1] : vector<16x16xf32> to vector<16xf32>
    %106 = vector.shape_cast %105 : vector<16xf32> to vector<16x1xf32>
    %107 = arith.truncf %104 : vector<16x16xf32> to vector<16x16xbf16>
    %cst_34 = arith.constant dense<0.000000e+00> : vector<16x8xf32>
    %108 = tpu.matmul %107, %89, %cst_34 {dimension_numbers = #tpu.dot_dimension_numbers<[1], [0], [0], [1], [0, 0, 1, 1], [], []>} : vector<16x16xbf16>, vector<16x8xbf16>, vector<16x8xf32> -> vector<16x8xf32>
    %109 = tpu.reciprocal %106 {approx = true} : vector<16x1xf32> -> vector<16x1xf32>
    %110 = vector.broadcast %109 : vector<16x1xf32> to vector<16x8xf32>
    %111 = arith.mulf %108, %110 : vector<16x8xf32>
    %c0_35 = arith.constant 0 : index
    %c24 = arith.constant 24 : index
    %112 = vector.load %arg11[%c0_35, %c24] : memref<16x32xf32, #tpu.memory_space<vmem>>, vector<16x8xf32>
    tpu.vector_store %arg11[%c0_35, %c24], %111 {strides = array<i32>} : memref<16x32xf32, #tpu.memory_space<vmem>>, vector<16x8xf32>,
    %c0_36 = arith.constant 0 : index
    %c0_37 = arith.constant 0 : index
    %113 = vector.load %arg11[%c0_36, %c0_37] : memref<16x32xf32, #tpu.memory_space<vmem>>, vector<16x32xf32>
    %c0_38 = arith.constant 0 : index
    %c0_39 = arith.constant 0 : index
    %114 = vector.load %arg4[%c0_38, %c0_39] : memref<1x32xf32, #tpu.memory_space<vmem>>, vector<1x32xf32>
    %115 = vector.broadcast %114 : vector<1x32xf32> to vector<16x32xf32>
    %116 = arith.addf %113, %115 : vector<16x32xf32>
    %cst_40 = arith.constant 0.000000e+00 : f32
    %117 = vector.broadcast %cst_40 : f32 to vector<16x32xf32>
    %118 = arith.maximumf %116, %117 : vector<16x32xf32>
    %119 = arith.truncf %118 : vector<16x32xf32> to vector<16x32xbf16>
    %c0_41 = arith.constant 0 : index
    %c0_42 = arith.constant 0 : index
    %120 = vector.load %arg5[%c0_41, %c0_42] : memref<32x128xbf16, #tpu.memory_space<vmem>>, vector<32x128xbf16>
    %cst_43 = arith.constant dense<0.000000e+00> : vector<16x128xf32>
    %121 = tpu.matmul %119, %120, %cst_43 {dimension_numbers = #tpu.dot_dimension_numbers<[1], [0], [0], [1], [0, 0, 1, 1], [], []>} : vector<16x32xbf16>, vector<32x128xbf16>, vector<16x128xf32> -> vector<16x128xf32>
    %c0_44 = arith.constant 0 : index
    %c0_45 = arith.constant 0 : index
    %122 = vector.load %arg7[%c0_44, %c0_45] : memref<1x128xf32, #tpu.memory_space<vmem>>, vector<1x128xf32>
    %123 = vector.broadcast %122 : vector<1x128xf32> to vector<16x128xf32>
    %124 = arith.mulf %121, %123 : vector<16x128xf32>
    %cst_46 = arith.constant dense<0.000000e+00> : vector<16xf32>
    %125 = vector.multi_reduction <add>, %124, %cst_46 [1] : vector<16x128xf32> to vector<16xf32>
    %126 = vector.shape_cast %125 : vector<16xf32> to vector<16x1xf32>
    %c0_47 = arith.constant 0 : index
    %c0_48 = arith.constant 0 : index
    %127 = vector.load %arg6[%c0_47, %c0_48] : memref<1x128xf32, #tpu.memory_space<vmem>>, vector<1x128xf32>
    %cst_49 = arith.constant dense<0.000000e+00> : vector<1x16xf32>
    %128 = tpu.matmul %127, %121, %cst_49 {dimension_numbers = #tpu.dot_dimension_numbers<[1], [1], [0], [0], [0, 0, 1, 0], [], []>} : vector<1x128xf32>, vector<16x128xf32>, vector<1x16xf32> -> vector<1x16xf32>
    %129 = arith.truncf %121 : vector<16x128xf32> to vector<16x128xbf16>
    %130 = vector.broadcast %126 : vector<16x1xf32> to vector<16x16xf32>
    %131 = vector.broadcast %128 : vector<1x16xf32> to vector<16x16xf32>
    %132 = arith.addf %130, %131 : vector<16x16xf32>
    %cst_50 = arith.constant 0.000000e+00 : f32
    %133 = vector.broadcast %cst_50 : f32 to vector<16x16xf32>
    %134 = arith.cmpf oge, %132, %133 : vector<16x16xf32>
    %cst_51 = arith.constant 2.000000e-01 : f32
    %135 = vector.broadcast %cst_51 : f32 to vector<16x16xf32>
    %136 = arith.mulf %135, %132 : vector<16x16xf32>
    %137 = arith.select %134, %132, %136 : vector<16x16xi1>, vector<16x16xf32>
    %138 = arith.extf %0 : vector<16x16xbf16> to vector<16x16xf32>
    %139 = arith.addf %137, %138 : vector<16x16xf32>
    %cst_52 = arith.constant dense<0xFF800000> : vector<16xf32>
    %140 = vector.multi_reduction <maximumf>, %139, %cst_52 [1] : vector<16x16xf32> to vector<16xf32>
    %141 = vector.shape_cast %140 : vector<16xf32> to vector<16x1xf32>
    %142 = vector.broadcast %141 : vector<16x1xf32> to vector<16x16xf32>
    %143 = arith.subf %139, %142 : vector<16x16xf32>
    %144 = math.exp %143 : vector<16x16xf32>
    %cst_53 = arith.constant dense<0.000000e+00> : vector<16xf32>
    %145 = vector.multi_reduction <add>, %144, %cst_53 [1] : vector<16x16xf32> to vector<16xf32>
    %146 = vector.shape_cast %145 : vector<16xf32> to vector<16x1xf32>
    %147 = arith.truncf %144 : vector<16x16xf32> to vector<16x16xbf16>
    %cst_54 = arith.constant dense<0.000000e+00> : vector<16x128xf32>
    %148 = tpu.matmul %147, %129, %cst_54 {dimension_numbers = #tpu.dot_dimension_numbers<[1], [0], [0], [1], [0, 0, 1, 1], [], []>} : vector<16x16xbf16>, vector<16x128xbf16>, vector<16x128xf32> -> vector<16x128xf32>
    %149 = tpu.reciprocal %146 {approx = true} : vector<16x1xf32> -> vector<16x1xf32>
    %150 = vector.broadcast %149 : vector<16x1xf32> to vector<16x128xf32>
    %151 = arith.mulf %148, %150 : vector<16x128xf32>
    %c0_55 = arith.constant 0 : index
    %c0_56 = arith.constant 0 : index
    %152 = vector.load %arg8[%c0_55, %c0_56] : memref<1x128xf32, #tpu.memory_space<vmem>>, vector<1x128xf32>
    %153 = vector.broadcast %152 : vector<1x128xf32> to vector<16x128xf32>
    %154 = arith.addf %151, %153 : vector<16x128xf32>
    %c0_57 = arith.constant 0 : index
    %c0_58 = arith.constant 0 : index
    %155 = vector.load %arg10[%c0_57, %c0_58] : memref<16x128xf32, #tpu.memory_space<vmem>>, vector<16x128xf32>
    tpu.vector_store %arg10[%c0_57, %c0_58], %154 {strides = array<i32>} : memref<16x128xf32, #tpu.memory_space<vmem>>, vector<16x128xf32>,
    return
  }
}

</mosaic_0001>

<bundles_post_ra>
// kernel: gat_forward.1
= control target key start
LH: loop header
LB: loop body
LE: loop exit
PB: predicated region body
PF: predicated region fallthrough
CT: control target
= control target key end

     0   :  { %v1130_v0 = vmov 0.0   ;;  %vm1131_vm0 = vmmov 0   ;;  %vm61_vm1 = vcmask 261120   ;;  %v1132_v10 = vmov 0.0|0.0   ;;  %s1139_s28 = smov 112   ;;  %s1140_s11 = smov 8   ;;  %s1349_s1 = inlined_call_operand.vmem [shape: bf16[32,32], index: 1, kind: input, shape index: {}]   ;;  %s1350_s2 = inlined_call_operand.vmem [shape: f32[32,4], index: 2, kind: input, shape index: {}]   ;;  %s1351_s0 = inlined_call_operand.vmem [shape: bf16[16,32], index: 0, kind: input, shape index: {}]   ;;  %s1352_s3 = inlined_call_operand.vmem [shape: f32[4,32], index: 3, kind: input, shape index: {}]   ;;  %s1353_s9 = inlined_call_operand.vmem [shape: bf16[16,16], index: 9, kind: input, shape index: {}]   ;;  %s1354_s5 = inlined_call_operand.vmem [shape: bf16[32,128], index: 5, kind: input, shape index: {}]   ;;  %s1355_s4 = inlined_call_operand.vmem [shape: f32[1,32], index: 4, kind: input, shape index: {}]   ;;  %s1356_s7 = inlined_call_operand.vmem [shape: f32[1,128], index: 7, kind: input, shape index: {}]   ;;  %s1357_s6 = inlined_call_operand.vmem [shape: f32[1,128], index: 6, kind: input, shape index: {}]   ;;  %s1358_s8 = inlined_call_operand.vmem [shape: f32[1,128], index: 8, kind: input, shape index: {}]   ;;  %s1359_s10 = inlined_call_operand.vmem [shape: f32[16,128], index: 10, kind: output, shape index: {}]  }
   0x1   :  { %980 = vmatprep.subr.bf16.mxu0 %v1130_v0  ;;  %v1085_v1 = vld [vmem:[%s1349_s1] sm:$0xff]   ;;  %984 = vmatprep.mubr.msk.bf16.mxu0 %vm1131_vm0, %v1130_v0  ;;  %v1086_v2 = vld [vmem:[%s1349_s1 + $0x8] sm:$0xff]   ;;  %v108_v5 = vld [vmem:[%s1350_s2 + $0x10] sm:$0xff]  ;;  %v1133_v11 = vmov 1   ;;  %v1134_v12 = vmov 0   ;;  %v1135_v21 = vmov 2   ;;  %v276_v25 = vlaneseq }
   0x2   :  { %981 = vmatpush3.bf16.msra.mxu0 %v1085_v1  ;;  %v106_v3 = vld [vmem:[%s1350_s2] sm:$0xff]  ;;  %v107_v4 = vld [vmem:[%s1350_s2 + $0x8] sm:$0xff]  ;;  %v109_v7 = vld [vmem:[%s1350_s2 + $0x18] sm:$0xff]  ;;  %1080 = vset.pattern.permute.xlu1 %v1133_v11  ;;  %v1136_v24 = vmov 3   ;;  %vm292_vm5 = vcmask 130048   ;;  %vm360_vm12 = vcmask 64512  }
   0x3   :  { %982 = vmatprep.subr.bf16.mxu0 %v1130_v0  ;;  %v1051_v6 = vpack.c.bf16 %v107_v4, %v106_v3  ;;  %v1087_v8 = vld [vmem:[%s1351_s0] sm:$0xff]   ;;  %v1055_v9 = vpack.c.bf16 %v109_v7, %v108_v5  ;;  %1079 = vset.pattern.permute.xlu0 %v1134_v12  ;;  %vm1061_vm2 = vmpackc.low %vm61_vm1, %vm61_vm1  ;;  %v1247_v26 = vshrl.u32 %v276_v25, 7  ;;  %s1141_s14 = smov 16   ;;  %vm464_vm13 = vcmask 130112  }
   0x4   :  { %v191_v18 = vld [vmem:[%s1352_s3] sm:$0xf]  ;;  %s1137_s3 = smov 120   ;;  %vm567_vm14 = vcmask 195712   ;;  %vm670_vm15 = vcmask 261312  }
   0x5   :  { %1052 = vmatprep.subr.bf16.mxu1 %v1051_v6  ;;  %v373_v27 = vsub.s32 1, %v1247_v26  ;;  %v278_v28 = vsub.s32 0, %v1247_v26  ;;  %v949_v31 = vld [vmem:[%s1353_s9] sm:$0xff]   ;;  %v477_v41 = vsub.s32 2, %v1247_v26  ;;  %v580_v56 = vsub.s32 3, %v1247_v26  ;;  %s1138_s9 = smov 104  }
   0x6   :  { %983 = vmatpush3.bf16.msra.mxu0 %v1086_v2  ;;  %1054 = vmatpush3.bf16.msra.mxu1 %v1051_v6  ;;  %v1256_v36 = vunpack.c.h.bf16 %v949_v31  ;;  %v1265_v48 = vunpack.c.l.bf16 %v949_v31 }
   0x7   :  { %1056 = vmatprep.subr.bf16.mxu1 %v1055_v9  ;;  %1059 = vmatprep.subr.bf16.mxu0 %v1132_v10 }
   0x9   :  { %985 = vmatmul.mubr.msk.bf16.vlgmr.msra.gmra.mrb[0].mxu0 %vm61_vm1, %v1087_v8 }
   0xa   :  { %1003 = vmatprep.mubr.msk.f32.mxu0 %vm1131_vm0, %v1130_v0  ;;  %1058 = vmatpush3.bf16.msra.mxu1 %v1055_v9 }
   0xb   :  { %1006 = vmatprep.subr.bf16.mxu1 %v1130_v0 }
  0xdc   :  { %v99_v13 = vpop.f32.mrb[0].mxu0 }
  0xdd   :  { %v986_v14 = vpop.f32.mrb[1].mxu0  ;;  %996 = vmatprep.mubr.msk.f32.mxu1 %vm61_vm1, %v99_v13 }
  0xde   :  { %v102_v15 = vpop.f32.mrb[2].mxu0 }
  0xdf   :  { %v1231_v16 = vpack.c.bf16 %v102_v15, %v99_v13  ;;  %v987_v17 = vpop.f32.mrb[3].mxu0  ;;  %997 = vmatmul.mubr.msk.f32.vlgmr.msra.gmra.mrb[0].mxu1 %vm61_vm1, %v102_v15 }
  0xe0   :  { %1008 = vmatprep.mubr.msk.bf16.mxu1 %vm1131_vm0, %v1130_v0 }
  0xe1   :  { %1062 = vmatpush3.bf16.xpose.msk.msra.mxu0 %vm1061_vm2, %v1231_v16  ;;  %1007 = vmatpush3.bf16.msra.mxu1 %v1231_v16 }
  0xe2   :  { %1012 = vmatprep.subr.bf16.mxu0 %v1130_v0  ;;  %1018 = vmatprep.subr.bf16.mxu1 %v1130_v0 }
  0xe8   :  { %1004 = vmatmul.mubr.msk.f32.vlgmr.msra.gmra.mrb[4].mxu0 %vm61_vm1, %v191_v18 }
  0xe9   :  { %1014 = vmatprep.mubr.msk.bf16.mxu0 %vm1131_vm0, %v1130_v0 }
 0x1b2   :  { %v998_v19 = vpop.f32.mrb[0].mxu1 }
 0x1b3   :  { %368 = vperm.xlu1 %1080, %v998_v19   ;;  %273 = vperm.xlu0 %1079, %v998_v19   ;;  %v182_v20 = vpop.f32.mrb[1].mxu1 }
 0x1b7   :  { %364 = vperm.xlu1 %1080, %v182_v20   ;;  %268 = vperm.xlu0 %1079, %v182_v20  }
 0x1bb   :  { %1081 = vset.pattern.permute.xlu1 %v1135_v21  ;;  %1082 = vset.pattern.permute.xlu0 %v1135_v21  ;;  %v261_v22 = vpop.f32.mrb[4].mxu0 }
 0x1bc   :  { %472 = vperm.xlu1 %1081, %v998_v19   ;;  %468 = vperm.xlu0 %1082, %v182_v20   ;;  %v1005_v23 = vpop.f32.mrb[5].mxu0  ;;  %v374_v29 = vrot.slane %v261_v22, %v373_v27  ;;  %v279_v30 = vrot.slane %v261_v22, %v278_v28  ;;  %v478_v51 = vrot.slane %v261_v22, %v477_v41 }
 0x1bd   :  { %v581_v3 = vrot.slane %v261_v22, %v580_v56 }
 0x1c0   :  { %1083 = vset.pattern.permute.xlu1 %v1136_v24  ;;  %1084 = vset.pattern.permute.xlu0 %v1136_v24 }
 0x1c1   :  { %571 = vperm.xlu1 %1083, %v182_v20   ;;  %575 = vperm.xlu0 %1084, %v998_v19  }
 0x1c5   :  { %405 = vrot.lane.b32.xlu1 %v1231_v16, %s1137_s3 }
 0x232   :  { %v369_v32 = vpop.permute.xlu1 %368  ;;  %v274_v33 = vpop.permute.xlu0 %273 }
 0x233   :  { %v376_v34 = vadd.f32 %v374_v29, %v369_v32  ;;  %v281_v35 = vadd.f32 %v279_v30, %v274_v33 }
 0x235   :  { %vm378_vm3 = vcmp.ge.f32.partialorder %v376_v34, 0.0  ;;  %v380_v37 = vmul.f32 0.2, %v376_v34  ;;  %vm283_vm4 = vcmp.ge.f32.partialorder %v281_v35, 0.0  ;;  %v285_v38 = vmul.f32 0.2, %v281_v35 }
 0x236   :  { %v365_v39 = vpop.permute.xlu1 %364  ;;  %v269_v40 = vpop.permute.xlu0 %268 }
 0x237   :  { %v375_v42 = vadd.f32 %v374_v29, %v365_v39  ;;  %v280_v43 = vadd.f32 %v279_v30, %v269_v40  ;;  %v287_v44 = vsel %vm283_vm4, %v281_v35, %v285_v38  ;;  %v382_v45 = vsel %vm378_vm3, %v376_v34, %v380_v37 }
 0x238   :  { %v1260_v46 = vadd.f32 %v1256_v36, %v287_v44  ;;  %v1263_v47 = vadd.f32 %v1256_v36, %v382_v45 }
 0x239   :  { %vm377_vm6 = vcmp.ge.f32.partialorder %v375_v42, 0.0  ;;  %v379_v49 = vmul.f32 0.2, %v375_v42  ;;  %vm282_vm7 = vcmp.ge.f32.partialorder %v280_v43, 0.0  ;;  %v284_v50 = vmul.f32 0.2, %v280_v43 }
 0x23a   :  { %v296_v52 = vsel %vm292_vm5, %v1260_v46, -inf  ;;  %v388_v61 = vsel %vm292_vm5, %v1263_v47, -inf }
 0x23b   :  { %v473_v53 = vpop.permute.xlu1 %472  ;;  %v469_v54 = vpop.permute.xlu0 %468  ;;  %297 = vmax.xlane.f32.xlu0 %v296_v52  ;;  %v286_v55 = vsel %vm282_vm7, %v280_v43, %v284_v50  ;;  %v381_v57 = vsel %vm377_vm6, %v375_v42, %v379_v49 }
 0x23c   :  { %v480_v58 = vadd.f32 %v478_v51, %v473_v53  ;;  %v479_v59 = vadd.f32 %v478_v51, %v469_v54  ;;  %v290_v60 = vadd.f32 %v1265_v48, %v286_v55  ;;  %v383_v62 = vadd.f32 %v1265_v48, %v381_v57 }
 0x23e   :  { %vm482_vm8 = vcmp.ge.f32.partialorder %v480_v58, 0.0  ;;  %v484_v63 = vmul.f32 0.2, %v480_v58  ;;  %vm481_vm9 = vcmp.ge.f32.partialorder %v479_v59, 0.0  ;;  %v483_v1 = vmul.f32 0.2, %v479_v59 }
 0x23f   :  { %389 = vmax.xlane.f32.xlu0 %v388_v61  ;;  %v293_v2 = vsel %vm292_vm5, %v290_v60, -inf  ;;  %v385_v12 = vsel %vm292_vm5, %v383_v62, -inf }
 0x240   :  { %294 = vmax.xlane.f32.xlu1 %v293_v2  ;;  %v572_v4 = vpop.permute.xlu1 %571  ;;  %v576_v5 = vpop.permute.xlu0 %575  ;;  %v486_v6 = vsel %vm482_vm8, %v480_v58, %v484_v63  ;;  %v485_v7 = vsel %vm481_vm9, %v479_v59, %v483_v1 }
 0x241   :  { %v582_v8 = vadd.f32 %v581_v3, %v572_v4  ;;  %v583_v9 = vadd.f32 %v581_v3, %v576_v5  ;;  %v488_v11 = vadd.f32 %v1256_v36, %v486_v6  ;;  %v487_v13 = vadd.f32 %v1265_v48, %v485_v7 }
 0x243   :  { %vm584_vm10 = vcmp.ge.f32.partialorder %v582_v8, 0.0  ;;  %v586_v14 = vmul.f32 0.2, %v582_v8  ;;  %vm585_vm11 = vcmp.ge.f32.partialorder %v583_v9, 0.0  ;;  %v587_v15 = vmul.f32 0.2, %v583_v9 }
 0x244   :  { %386 = vmax.xlane.f32.xlu1 %v385_v12  ;;  %v406_v17 = vpop.permute.xlu1 %405  ;;  %v492_v18 = vsel %vm292_vm5, %v488_v11, -inf  ;;  %v489_v22 = vsel %vm292_vm5, %v487_v13, -inf }
 0x245   :  { %493 = vmax.xlane.f32.xlu0 %v492_v18  ;;  %1013 = vmatpush3.bf16.msra.mxu0 %v406_v17  ;;  %v589_v19 = vsel %vm585_vm11, %v583_v9, %v587_v15  ;;  %v588_v20 = vsel %vm584_vm10, %v582_v8, %v586_v14 }
 0x246   :  { %v591_v21 = vadd.f32 %v1256_v36, %v589_v19  ;;  %1024 = vmatprep.subr.bf16.mxu0 %v1130_v0  ;;  %v590_v23 = vadd.f32 %v1265_v48, %v588_v20 }
 0x248   :  { %490 = vmax.xlane.f32.xlu1 %v489_v22  ;;  %v595_v24 = vsel %vm292_vm5, %v591_v21, -inf  ;;  %v592_v25 = vsel %vm292_vm5, %v590_v23, -inf }
 0x249   :  { %596 = vmax.xlane.f32.xlu0 %v595_v24 }
 0x24c   :  { %593 = vmax.xlane.f32.xlu1 %v592_v25 }
 0x25d   :  { %611 = vrot.lane.b32.xlu1 %v1231_v16, %s1138_s9 }
 0x25f   :  { %508 = vrot.lane.b32.xlu0 %v1231_v16, %s1139_s28 }
 0x2c8   :  { %v298_v27 = vpop.xlane.xlu0 %297 }
 0x2c9   :  { %v300_v29 = vsub.f32 %v1260_v46, %v298_v27 }
 0x2cb   :  { %v303_v30 = vmul.f32 1.442695, %v300_v29 }
 0x2cc   :  { %v390_v31 = vpop.xlane.xlu0 %389 }
 0x2cd   :  { %v392_v32 = vsub.f32 %v1263_v47, %v390_v31  ;;  %v295_v33 = vpop.xlane.xlu1 %294  ;;  %1090 = vpow2.f32 %v303_v30 }
 0x2ce   :  { %v299_v34 = vsub.f32 %v290_v60, %v295_v33 }
 0x2cf   :  { %v395_v35 = vmul.f32 1.442695, %v392_v32 }
 0x2d0   :  { %v301_v37 = vmul.f32 1.442695, %v299_v34 }
 0x2d1   :  { %1092 = vpow2.f32 %v395_v35  ;;  %v387_v38 = vpop.xlane.xlu1 %386  ;;  %v1088_v35 = vld [vmem:[%s1354_s5] sm:$0xff]  }
 0x2d2   :  { %1094 = vpow2.f32 %v301_v37  ;;  %v391_v39 = vsub.f32 %v383_v62, %v387_v38  ;;  %v494_v40 = vpop.xlane.xlu0 %493 }
 0x2d3   :  { %v496_v41 = vsub.f32 %v488_v11, %v494_v40 }
 0x2d4   :  { %v393_v42 = vmul.f32 1.442695, %v391_v39 }
 0x2d5   :  { %v499_v16 = vmul.f32 1.442695, %v496_v41  ;;  %v491_v43 = vpop.xlane.xlu1 %490  ;;  %v1089_v41 = vld [vmem:[%s1354_s5 + $0x8] sm:$0xff]   ;;  %s1142_s5 = smov 24  }
 0x2d6   :  { %1096 = vpow2.f32 %v393_v42  ;;  %v495_v44 = vsub.f32 %v487_v13, %v491_v43  ;;  %v597_v45 = vpop.xlane.xlu0 %596 }
 0x2d7   :  { %1098 = vpow2.f32 %v499_v16  ;;  %v599_v46 = vsub.f32 %v591_v21, %v597_v45  ;;  %v1091_v51 = vpop.eup %1090 }
 0x2d8   :  { %v497_v47 = vmul.f32 1.442695, %v495_v44  ;;  %v308_v11 = vsel %vm292_vm5, %v1091_v51, 0.0 }
 0x2d9   :  { %v602_v49 = vmul.f32 1.442695, %v599_v46  ;;  %v594_v50 = vpop.xlane.xlu1 %593 }
 0x2da   :  { %1100 = vpow2.f32 %v497_v47  ;;  %v598_v52 = vsub.f32 %v590_v23, %v594_v50  ;;  %v509_v58 = vpop.permute.xlu0 %508 }
 0x2db   :  { %v1093_v53 = vpop.eup %1092  ;;  %1102 = vpow2.f32 %v602_v49 }
 0x2dc   :  { %v1095_v54 = vpop.eup %1094  ;;  %v600_v55 = vmul.f32 1.442695, %v598_v52  ;;  %v400_v56 = vsel %vm292_vm5, %v1093_v53, 0.0 }
 0x2dd   :  { %401 = vadd.xlane.f32.xlu0 %v400_v56  ;;  %v311_v57 = vpack.c.bf16 %v1091_v51, %v1095_v54  ;;  %v612_v63 = vpop.permute.xlu1 %611 }
 0x2de   :  { %1104 = vpow2.f32 %v600_v55 }
 0x2df   :  { %1009 = vmatmul.mubr.msk.bf16.vlgmr.msra.gmra.mrb[4].mxu1 %vm292_vm5, %v311_v57 }
 0x2e0   :  { %v1097_v59 = vpop.eup %1096  ;;  %1019 = vmatpush3.bf16.msra.mxu1 %v509_v58  ;;  %1020 = vmatprep.mubr.msk.bf16.mxu1 %vm1131_vm0, %v1130_v0 }
 0x2e1   :  { %v1099_v60 = vpop.eup %1098  ;;  %v403_v61 = vpack.c.bf16 %v1093_v53, %v1097_v59  ;;  %1030 = vmatprep.subr.bf16.mxu1 %v1130_v0  ;;  %v397_v4 = vsel %vm292_vm5, %v1097_v59, 0.0 }
 0x2e2   :  { %v504_v62 = vsel %vm292_vm5, %v1099_v60, 0.0 }
 0x2e3   :  { %505 = vadd.xlane.f32.xlu1 %v504_v62  ;;  %1015 = vmatmul.mubr.msk.bf16.vlgmr.msra.gmra.mrb[8].mxu0 %vm292_vm5, %v403_v61 }
 0x2e4   :  { %v1101_v1 = vpop.eup %1100  ;;  %1025 = vmatpush3.bf16.msra.mxu0 %v612_v63  ;;  %1026 = vmatprep.mubr.msk.bf16.mxu0 %vm1131_vm0, %v1130_v0 }
 0x2e5   :  { %v501_v2 = vsel %vm292_vm5, %v1101_v1, 0.0  ;;  %v507_v3 = vpack.c.bf16 %v1099_v60, %v1101_v1  ;;  %1063 = vmatprep.subr.bf16.mxu0 %v1132_v10  ;;  %v1103_v5 = vpop.eup %1102  ;;  %v305_v10 = vsel %vm292_vm5, %v1095_v54, 0.0  ;;  %v941_v1 = vld [vmem:[%s1355_s4] ss:$0 sm:$0xff] }
 0x2e6   :  { %502 = vadd.xlane.f32.xlu0 %v501_v2  ;;  %v607_v9 = vsel %vm292_vm5, %v1103_v5, 0.0 }
 0x2e7   :  { %398 = vadd.xlane.f32.xlu1 %v397_v4  ;;  %1021 = vmatmul.mubr.msk.bf16.vlgmr.msra.gmra.mrb[8].mxu1 %vm292_vm5, %v507_v3 }
 0x2e8   :  { %v1105_v6 = vpop.eup %1104  ;;  %1034 = vmatprep.mubr.msk.bf16.mxu1 %vm1131_vm0, %v1130_v0  ;;  %1031 = vmatpush3.bf16.msra.mxu1 %v1088_v35 }
 0x2e9   :  { %v604_v7 = vsel %vm292_vm5, %v1105_v6, 0.0  ;;  %v610_v8 = vpack.c.bf16 %v1103_v5, %v1105_v6  ;;  %1032 = vmatprep.subr.bf16.mxu1 %v1130_v0 }
 0x2ea   :  { %605 = vadd.xlane.f32.xlu0 %v604_v7 }
 0x2eb   :  { %608 = vadd.xlane.f32.xlu1 %v607_v9  ;;  %1027 = vmatmul.mubr.msk.bf16.vlgmr.msra.gmra.mrb[12].mxu0 %vm292_vm5, %v610_v8  ;;  %v945_v9 = vld [vmem:[%s1356_s7] ss:$0 sm:$0xff] }
 0x2ec   :  { %1042 = vmatprep.mubr.msk.f32.mxu0 %vm1131_vm0, %v1130_v0  ;;  %1033 = vmatpush3.bf16.msra.mxu1 %v1089_v41 }
 0x2ed   :  { %1045 = vmatprep.subr.bf16.mxu1 %v1130_v0 }
 0x2ee   :  { %306 = vadd.xlane.f32.xlu0 %v305_v10 }
 0x2ef   :  { %309 = vadd.xlane.f32.xlu1 %v308_v11 }
 0x36a   :  { %v402_v12 = vpop.xlane.xlu0 %401 }
 0x370   :  { %v506_v13 = vpop.xlane.xlu1 %505 }
 0x373   :  { %v503_v14 = vpop.xlane.xlu0 %502 }
 0x374   :  { %v399_v15 = vpop.xlane.xlu1 %398 }
 0x377   :  { %v606_v17 = vpop.xlane.xlu0 %605 }
 0x378   :  { %v609_v18 = vpop.xlane.xlu1 %608 }
 0x37b   :  { %v307_v19 = vpop.xlane.xlu0 %306 }
 0x37c   :  { %v310_v20 = vpop.xlane.xlu1 %309  ;;  %1106 = vrcp.f32 %v307_v19 }
 0x37d   :  { %1108 = vrcp.f32 %v310_v20 }
 0x37e   :  { %1110 = vrcp.f32 %v399_v15 }
 0x37f   :  { %1112 = vrcp.f32 %v402_v12 }
 0x380   :  { %1114 = vrcp.f32 %v506_v13 }
 0x381   :  { %1116 = vrcp.f32 %v503_v14 }
 0x382   :  { %1118 = vrcp.f32 %v606_v17 }
 0x383   :  { %1120 = vrcp.f32 %v609_v18  ;;  %v760_v18 = vld [vmem:[%s1357_s6] sm:$0x1] }
 0x386   :  { %v1107_v21 = vpop.eup %1106 }
 0x387   :  { %v1109_v25 = vpop.eup %1108 }
 0x388   :  { %v1111_v31 = vpop.eup %1110 }
 0x389   :  { %v1113_v37 = vpop.eup %1112 }
 0x38a   :  { %v1115_v16 = vpop.eup %1114 }
 0x38b   :  { %v1117_v44 = vpop.eup %1116 }
 0x38c   :  { %v1119_v51 = vpop.eup %1118 }
 0x38d   :  { %v1121_v53 = vpop.eup %1120 }
 0x3b2   :  { %v349_v22 = vpop.f32.mrb[4].mxu1 }
 0x3b3   :  { %v358_v23 = vmul.f32 %v1107_v21, %v349_v22  ;;  %v1010_v24 = vpop.f32.mrb[5].mxu1 }
 0x3b4   :  { %v352_v27 = vpop.f32.mrb[6].mxu1 }
 0x3b5   :  { %361 = vst.msk [vmem:[#allocation2] sm:$0xff] %vm360_vm12, %v358_v23  ;;  %v359_v29 = vmul.f32 %v1109_v25, %v352_v27  ;;  %v1011_v30 = vpop.f32.mrb[7].mxu1 }
 0x3b6   :  { %v445_v32 = vpop.f32.mrb[8].mxu0 }
 0x3b7   :  { %362 = vst.msk [vmem:[#allocation2 + $0x8] sm:$0xff] %vm360_vm12, %v359_v29  ;;  %v454_v33 = vmul.f32 %v1111_v31, %v445_v32  ;;  %v1016_v34 = vpop.f32.mrb[9].mxu0 }
 0x3b8   :  { %v448_v38 = vpop.f32.mrb[10].mxu0 }
 0x3b9   :  { %v455_v39 = vmul.f32 %v1113_v37, %v448_v38  ;;  %458 = vrot.lane.b32.xlu0 %v454_v33, %s1140_s11  ;;  %v1017_v40 = vpop.f32.mrb[11].mxu0 }
 0x3ba   :  { %v548_v42 = vpop.f32.mrb[8].mxu1 }
 0x3bb   :  { %v1022_v43 = vpop.f32.mrb[9].mxu1  ;;  %460 = vrot.lane.b32.xlu1 %v455_v39, %s1140_s11  ;;  %v557_v46 = vmul.f32 %v1117_v44, %v548_v42 }
 0x3bc   :  { %v551_v45 = vpop.f32.mrb[10].mxu1 }
 0x3bd   :  { %v558_v47 = vmul.f32 %v1115_v16, %v551_v45  ;;  %v1023_v49 = vpop.f32.mrb[11].mxu1 }
 0x3be   :  { %v651_v50 = vpop.f32.mrb[12].mxu0 }
 0x3bf   :  { %563 = vrot.lane.b32.xlu0 %v558_v47, %s1141_s14  ;;  %561 = vrot.lane.b32.xlu1 %v557_v46, %s1141_s14  ;;  %v1028_v52 = vpop.f32.mrb[13].mxu0  ;;  %v660_v55 = vmul.f32 %v1119_v51, %v651_v50  ;;  %v947_v46 = vld [vmem:[%s1358_s8] ss:$0 sm:$0xff] }
 0x3c0   :  { %v654_v54 = vpop.f32.mrb[14].mxu0 }
 0x3c1   :  { %v661_v56 = vmul.f32 %v1121_v53, %v654_v54  ;;  %v1029_v57 = vpop.f32.mrb[15].mxu0 }
 0x3c3   :  { %664 = vrot.lane.b32.xlu1 %v660_v55, %s1142_s5  ;;  %666 = vrot.lane.b32.xlu0 %v661_v56, %s1142_s5 }
 0x42b   :  { %v459_v58 = vpop.permute.xlu0 %458 }
 0x42c   :  { %465 = vst.msk [vmem:[#allocation2] sm:$0xff] %vm464_vm13, %v459_v58 }
 0x42d   :  { %v461_v59 = vpop.permute.xlu1 %460 }
 0x42e   :  { %466 = vst.msk [vmem:[#allocation2 + $0x8] sm:$0xff] %vm464_vm13, %v461_v59 }
 0x431   :  { %v564_v60 = vpop.permute.xlu0 %563  ;;  %v562_v61 = vpop.permute.xlu1 %561 }
 0x432   :  { %569 = vst.msk [vmem:[#allocation2 + $0x8] sm:$0xff] %vm567_vm14, %v564_v60  ;;  %568 = vst.msk [vmem:[#allocation2] sm:$0xff] %vm567_vm14, %v562_v61 }
 0x435   :  { %v665_v62 = vpop.permute.xlu1 %664  ;;  %v667_v63 = vpop.permute.xlu0 %666 }
 0x436   :  { %671 = vst.msk [vmem:[#allocation2] sm:$0xff] %vm670_vm15, %v665_v62  ;;  %672 = vst.msk [vmem:[#allocation2 + $0x8] sm:$0xff] %vm670_vm15, %v667_v63 }
 0x43d   :  { %v673_v2 = vld [vmem:[#allocation2] sm:$0xff]  ;;  %v674_v3 = vld [vmem:[#allocation2 + $0x8] sm:$0xff] }
 0x43e   :  { %v682_v4 = vadd.f32 %v941_v1, %v673_v2  ;;  %v683_v5 = vadd.f32 %v941_v1, %v674_v3 }
 0x440   :  { %v684_v6 = vmax.f32 %v682_v4, 0.0  ;;  %v685_v7 = vmax.f32 %v683_v5, 0.0 }
 0x442   :  { %v686_v8 = vpack.c.bf16 %v685_v7, %v684_v6 }
 0x444   :  { %1035 = vmatmul.mubr.msk.bf16.vlgmr.msra.gmra.mrb[12].mxu1 %vm61_vm1, %v686_v8 }
 0x445   :  { %1047 = vmatprep.mubr.msk.bf16.mxu1 %vm1131_vm0, %v1130_v0 }
 0x517   :  { %v740_v10 = vpop.f32.mrb[12].mxu1 }
 0x518   :  { %v1036_v11 = vpop.f32.mrb[13].mxu1  ;;  %v754_v12 = vmul.f32 %v945_v9, %v740_v10 }
 0x519   :  { %v743_v13 = vpop.f32.mrb[14].mxu1 }
 0x51a   :  { %v1064_v14 = vpack.c.bf16 %v743_v13, %v740_v10  ;;  %756 = vadd.xlane.f32.xlu1 %v754_v12  ;;  %v1037_v15 = vpop.f32.mrb[15].mxu1  ;;  %v755_v17 = vmul.f32 %v945_v9, %v743_v13 }
 0x51c   :  { %1065 = vmatpush3.bf16.xpose.msra.mxu0 %v1064_v14  ;;  %1046 = vmatpush3.bf16.msra.mxu1 %v1064_v14 }
 0x51d   :  { %758 = vadd.xlane.f32.xlu0 %v755_v17 }
 0x523   :  { %1043 = vmatmul.mubr.f32.vlgmr.msra.gmra.mrb[6].mxu0 %v760_v18 }
 0x5a7   :  { %v757_v21 = vpop.xlane.xlu1 %756 }
 0x5aa   :  { %v759_v22 = vpop.xlane.xlu0 %758 }
 0x5f6   :  { %v827_v0 = vpop.f32.mrb[6].mxu0 }
 0x5f7   :  { %v835_v19 = vrot.slane %v827_v0, %v278_v28  ;;  %v1044_v20 = vpop.f32.mrb[7].mxu0 }
 0x5f9   :  { %v836_v23 = vadd.f32 %v835_v19, %v757_v21  ;;  %v837_v24 = vadd.f32 %v835_v19, %v759_v22 }
 0x5fb   :  { %v840_v25 = vmul.f32 0.2, %v836_v23  ;;  %v841_v27 = vmul.f32 0.2, %v837_v24  ;;  %vm839_vm0 = vcmp.ge.f32.partialorder %v837_v24, 0.0  ;;  %vm838_vm1 = vcmp.ge.f32.partialorder %v836_v23, 0.0 }
 0x5fd   :  { %v843_v29 = vsel %vm839_vm0, %v837_v24, %v841_v27  ;;  %v842_v30 = vsel %vm838_vm1, %v836_v23, %v840_v25 }
 0x5fe   :  { %v845_v31 = vadd.f32 %v1256_v36, %v843_v29  ;;  %v844_v32 = vadd.f32 %v1265_v48, %v842_v30 }
 0x600   :  { %v849_v33 = vsel %vm292_vm5, %v845_v31, -inf  ;;  %v846_v26 = vsel %vm292_vm5, %v844_v32, -inf }
 0x601   :  { %850 = vmax.xlane.f32.xlu1 %v849_v33  ;;  %847 = vmax.xlane.f32.xlu0 %v846_v26 }
 0x68e   :  { %v851_v28 = vpop.xlane.xlu1 %850  ;;  %v848_v34 = vpop.xlane.xlu0 %847 }
 0x68f   :  { %v853_v35 = vsub.f32 %v845_v31, %v851_v28  ;;  %v852_v37 = vsub.f32 %v844_v32, %v848_v34 }
 0x691   :  { %v856_v38 = vmul.f32 1.442695, %v853_v35  ;;  %v854_v39 = vmul.f32 1.442695, %v852_v37 }
 0x693   :  { %1122 = vpow2.f32 %v856_v38 }
 0x694   :  { %1124 = vpow2.f32 %v854_v39 }
 0x69d   :  { %v1123_v40 = vpop.eup %1122 }
 0x69e   :  { %v1125_v41 = vpop.eup %1124  ;;  %v861_v36 = vsel %vm292_vm5, %v1123_v40, 0.0 }
 0x69f   :  { %862 = vadd.xlane.f32.xlu1 %v861_v36  ;;  %v858_v48 = vsel %vm292_vm5, %v1125_v41, 0.0  ;;  %v864_v42 = vpack.c.bf16 %v1123_v40, %v1125_v41 }
 0x6a0   :  { %859 = vadd.xlane.f32.xlu0 %v858_v48 }
 0x6a1   :  { %1048 = vmatmul.mubr.msk.bf16.vlgmr.msra.gmra.mrb[16].mxu1 %vm292_vm5, %v864_v42 }
 0x72c   :  { %v863_v43 = vpop.xlane.xlu1 %862 }
 0x72d   :  { %v860_v16 = vpop.xlane.xlu0 %859 }
 0x72e   :  { %1126 = vrcp.f32 %v860_v16 }
 0x72f   :  { %1128 = vrcp.f32 %v863_v43 }
 0x738   :  { %v1127_v44 = vpop.eup %1126 }
 0x739   :  { %v1129_v50 = vpop.eup %1128 }
 0x774   :  { %v902_v45 = vpop.f32.mrb[16].mxu1 }
 0x775   :  { %v911_v47 = vmul.f32 %v1127_v44, %v902_v45  ;;  %v1049_v49 = vpop.f32.mrb[17].mxu1 }
 0x776   :  { %v905_v51 = vpop.f32.mrb[18].mxu1 }
 0x777   :  { %v920_v52 = vadd.f32 %v947_v46, %v911_v47  ;;  %v912_v53 = vmul.f32 %v1129_v50, %v905_v51  ;;  %v1050_v54 = vpop.f32.mrb[19].mxu1 }
 0x779   :  { %922 = vst [vmem:[%s1359_s10] sm:$0xff] %v920_v52  ;;  %v921_v55 = vadd.f32 %v947_v46, %v912_v53 }
 0x77b   :  { %923 = vst [vmem:[%s1359_s10 + $0x8] sm:$0xff] %v921_v55 }

</bundles_post_ra>
